<compile_context>
chip_gen: v7x
topology: tpu7x:2x2x1
jax: 0.10.0
libtpu: 0.0.40
codegen_flags: <defaults>
</compile_context>

<pallas_src>
import jax
import jax.numpy as jnp
from jax.experimental import pallas as pl
from jax.experimental.pallas import tpu as pltpu

LN_EPS = 1e-5  # torch.nn.LayerNorm default


def _round_up(x, m):
    return ((x + m - 1) // m) * m


# ----------------------------------------------------------------------------
# Kernels
# ----------------------------------------------------------------------------
def _prenorm_linear_kernel(x_ref, w_ref, b_ref, o_ref):
    """Generic path.  x: (TM, D); w: (D, Dout) = gamma-folded; b: (1, Dout)."""
    x = x_ref[...].astype(jnp.float32)
    mean = jnp.mean(x, axis=-1, keepdims=True)
    xc = x - mean
    var = jnp.mean(xc * xc, axis=-1, keepdims=True)
    xhat = xc * jax.lax.rsqrt(var + LN_EPS)
    out = jnp.dot(xhat.astype(w_ref.dtype), w_ref[...],
                  preferred_element_type=jnp.float32)
    o_ref[...] = (out + b_ref[...]).astype(o_ref.dtype)


def _prenorm_linear_packed_kernel(x_ref, m_ref, w_ref, b_ref, o_ref):
    """Lane-dense packed path: k = 128//D tokens per 128-lane row.

    x: (TM, 128)            k tokens per row
    m: (128, 128) f32       block_diag(ones(D,D)) / D  -> per-token mean bcast
    w: (128, 128)           block_diag of k copies of gamma-folded W'
    b: (1, 128)             k copies of folded bias
    """
    x = x_ref[...].astype(jnp.float32)
    m = m_ref[...]
    # Per-token mean, broadcast back to each token's D lanes (MXU, row-local).
    mean = jnp.dot(x, m, preferred_element_type=jnp.float32)
    xc = x - mean
    var = jnp.dot(xc * xc, m, preferred_element_type=jnp.float32)
    xhat = xc * jax.lax.rsqrt(var + LN_EPS)
    out = jnp.dot(xhat.astype(w_ref.dtype), w_ref[...],
                  preferred_element_type=jnp.float32)
    o_ref[...] = (out + b_ref[...]).astype(o_ref.dtype)


# ----------------------------------------------------------------------------
# Tiling / VMEM budgeting
# ----------------------------------------------------------------------------
def _derive_tiling(n_rows, row_in_bytes, row_out_bytes, resident_bytes,
                   block_rows, stream_budget_bytes=24 << 20):
    """Pick a row-tile size from a per-TensorCore VMEM budget.

    Streaming tiles are double-buffered by the Pallas pipeline; params are
    VMEM-resident.  24 MiB budget keeps us inside v5e's 16 MiB scoped default
    (raised via vmem_limit_bytes), v6e's 32 MiB and v7x's 64 MiB physical/TC.
    """
    avail = max(stream_budget_bytes - resident_bytes, 1 << 20)
    tm_cap = avail // (2 * (row_in_bytes + row_out_bytes))
    tm = max(8, min(int(block_rows), int(tm_cap)))
    tm = min(tm, _round_up(n_rows, 8))
    tm = max(8, (tm // 8) * 8)
    need = resident_bytes + 2 * tm * (row_in_bytes + row_out_bytes)
    vmem_limit = int(min(max(2 * need, 32 << 20), 48 << 20))
    return tm, vmem_limit


# ----------------------------------------------------------------------------
# Wrapper
# ----------------------------------------------------------------------------
def prenorm_linear(z, gamma, beta, w, b, *, block_rows=1024, mxu_dtype=None):
    """z: (B, S, D) -> (B, S, Dout).  LayerNorm(D) then Linear(D, Dout).

    mxu_dtype: optional dtype to feed the projection MXU with (e.g. bf16).
      Only worthwhile when the matmul dims make the kernel MXU-bound; keep
      None (f32 feed) on v5e / for small D — the kernel is HBM-bound there.
    """
    B, S, D = z.shape
    Dout = w.shape[-1]
    N = B * S
    x2d = z.reshape(N, D)
    itemsize = jnp.dtype(z.dtype).itemsize

    # Fold the LN affine into the linear (in f32, once, outside the kernel).
    w_f32 = w.astype(jnp.float32)
    w_fold = gamma.astype(jnp.float32)[:, None] * w_f32          # (D, Dout)
    b_fold = beta.astype(jnp.float32) @ w_f32 + b.astype(jnp.float32)  # (Dout,)

    dims_ok = (D == Dout) and (D < 128) and (128 % D == 0)
    packed = dims_ok and (N % (128 // D) == 0)

    if packed:
        # -------- lane-dense packed path (Mobile-Former D = Dout = 32) ------
        k = 128 // D
        n_rows = N // k
        x_in = x2d.reshape(n_rows, 128)                 # free contiguous view
        eye_k = jnp.eye(k, dtype=jnp.float32)
        m_mat = jnp.kron(eye_k, jnp.ones((D, D), jnp.float32)) / float(D)
        w_blk = jnp.kron(eye_k, w_fold)                 # (128, 128)
        if mxu_dtype is not None:
            w_blk = w_blk.astype(mxu_dtype)
        b_in = jnp.tile(b_fold, (k,)).reshape(1, 128)

        resident = (m_mat.size * 4 + w_blk.size * jnp.dtype(w_blk.dtype).itemsize
                    + b_in.size * 4)
        tm, vmem_limit = _derive_tiling(n_rows, 128 * itemsize, 128 * itemsize,
                                        resident, block_rows)
        grid = (pl.cdiv(n_rows, tm),)

        out_packed = pl.pallas_call(
            _prenorm_linear_packed_kernel,
            out_shape=jax.ShapeDtypeStruct((n_rows, 128), z.dtype),
            grid_spec=pltpu.PrefetchScalarGridSpec(
                num_scalar_prefetch=0,
                grid=grid,
                in_specs=[
                    pl.BlockSpec((tm, 128), lambda i: (i, 0)),     # x (streamed)
                    pl.BlockSpec((128, 128), lambda i: (0, 0)),    # mean matrix
                    pl.BlockSpec((128, 128), lambda i: (0, 0)),    # block-diag W'
                    pl.BlockSpec((1, 128), lambda i: (0, 0)),      # packed bias
                ],
                out_specs=pl.BlockSpec((tm, 128), lambda i: (i, 0)),
            ),
            compiler_params=pltpu.CompilerParams(
                dimension_semantics=("parallel",),
                vmem_limit_bytes=vmem_limit,
            ),
        )(x_in, m_mat, w_blk, b_in)
        return out_packed.reshape(B, S, Dout)

    # -------- generic row-tiled path ----------------------------------------
    # TODO(synk): for large non-power-of-two D (e.g. Mobile-Former's 192) the
    # input/output lanes are still not fully dense; packing would need a
    # cross-lane relayout that is not worth it for a fallback path.
    w_in = w_fold.astype(mxu_dtype) if mxu_dtype is not None else w_fold
    b_in = b_fold.reshape(1, Dout)

    resident = (w_in.size * jnp.dtype(w_in.dtype).itemsize + b_in.size * 4)
    tm, vmem_limit = _derive_tiling(N, D * itemsize, Dout * itemsize,
                                    resident, block_rows)
    grid = (pl.cdiv(N, tm),)

    out2d = pl.pallas_call(
        _prenorm_linear_kernel,
        out_shape=jax.ShapeDtypeStruct((N, Dout), z.dtype),
        grid_spec=pltpu.PrefetchScalarGridSpec(
            num_scalar_prefetch=0,
            grid=grid,
            in_specs=[
                pl.BlockSpec((tm, D), lambda i: (i, 0)),       # x (streamed)
                pl.BlockSpec((D, Dout), lambda i: (0, 0)),     # folded W'
                pl.BlockSpec((1, Dout), lambda i: (0, 0)),     # folded bias
            ],
            out_specs=pl.BlockSpec((tm, Dout), lambda i: (i, 0)),
        ),
        compiler_params=pltpu.CompilerParams(
            dimension_semantics=("parallel",),
            vmem_limit_bytes=vmem_limit,
        ),
    )(x2d, w_in, b_in)
    return out2d.reshape(B, S, Dout)


# ----------------------------------------------------------------------------
# Reference + test
# ----------------------------------------------------------------------------
def _reference(z, gamma, beta, w, b):
    x = z.astype(jnp.float32)
    mean = jnp.mean(x, axis=-1, keepdims=True)
    var = jnp.mean((x - mean) ** 2, axis=-1, keepdims=True)
    xn = (x - mean) * jax.lax.rsqrt(var + LN_EPS)
    y = xn * gamma.astype(jnp.float32) + beta.astype(jnp.float32)
    return (y @ w.astype(jnp.float32) + b.astype(jnp.float32)).astype(z.dtype)


if __name__ == "__main__":
    key = jax.random.PRNGKey(0)

    # Case 1: Mobile-Former-like former branch (batch=2, tokens=8, dim=32,
    # fn = Linear(32, 32)) -> packed lane-dense path (4 tokens / 128 lanes).
    B, S, D = 2, 8, 32
    k1, k2, k3, k4, k5 = jax.random.split(key, 5)
    z = jax.random.normal(k1, (B, S, D), dtype=jnp.float32)
    gamma = 1.0 + 0.1 * jax.random.normal(k2, (D,), dtype=jnp.float32)
    beta = 0.1 * jax.random.normal(k3, (D,), dtype=jnp.float32)
    w = jax.random.normal(k4, (D, D), dtype=jnp.float32) / jnp.sqrt(D)
    b = 0.01 * jax.random.normal(k5, (D,), dtype=jnp.float32)

    out = jax.block_until_ready(prenorm_linear(z, gamma, beta, w, b))
    ref = _reference(z, gamma, beta, w, b)
    assert out.shape == (B, S, D), out.shape
    err = float(jnp.max(jnp.abs(out - ref)))
    assert jnp.allclose(out, ref, atol=2e-4, rtol=2e-4), err

    # Case 2: generic fallback path (D not a divisor of 128, Dout != D,
    # ragged row tile handled without any wrapper-side padding).
    B2, S2, D2, Dout2 = 2, 9, 48, 80
    g1, g2, g3, g4, g5 = jax.random.split(jax.random.PRNGKey(1), 5)
    z2 = jax.random.normal(g1, (B2, S2, D2), dtype=jnp.float32)
    gamma2 = 1.0 + 0.1 * jax.random.normal(g2, (D2,), dtype=jnp.float32)
    beta2 = 0.1 * jax.random.normal(g3, (D2,), dtype=jnp.float32)
    w2 = jax.random.normal(g4, (D2, Dout2), dtype=jnp.float32) / jnp.sqrt(D2)
    b2 = 0.01 * jax.random.normal(g5, (Dout2,), dtype=jnp.float32)

    out2 = jax.block_until_ready(prenorm_linear(z2, gamma2, beta2, w2, b2))
    ref2 = _reference(z2, gamma2, beta2, w2, b2)
    assert out2.shape == (B2, S2, Dout2), out2.shape
    err2 = float(jnp.max(jnp.abs(out2 - ref2)))
    assert jnp.allclose(out2, ref2, atol=2e-4, rtol=2e-4), err2

    print("KERNEL_OK")
</pallas_src>

<mosaic_0001>
module attributes {stable_mosaic.version = 11 : i64} {
  func.func @_prenorm_linear_packed_kernel(%arg0: i32, %arg1: memref<8x128xf32, #tpu.memory_space<vmem>>, %arg2: memref<128x128xf32, #tpu.memory_space<vmem>>, %arg3: memref<128x128xf32, #tpu.memory_space<vmem>>, %arg4: memref<1x128xf32, #tpu.memory_space<vmem>>, %arg5: memref<8x128xf32, #tpu.memory_space<vmem>>) attributes {dimension_semantics = [#tpu.dimension_semantics<parallel>], iteration_bounds = array<i64: 1>, scalar_prefetch = 0 : i64, scratch_operands = 0 : i64, tpu.core_type = #tpu.core_type<tc>, window_params = [{transform_indices = @transform_0, window_bounds = array<i64: 8, 128>}, {pipeline_mode = #tpu.pipeline_mode<synchronous>, transform_indices = @transform_1, window_bounds = array<i64: 128, 128>}, {pipeline_mode = #tpu.pipeline_mode<synchronous>, transform_indices = @transform_2, window_bounds = array<i64: 128, 128>}, {pipeline_mode = #tpu.pipeline_mode<synchronous>, transform_indices = @transform_3, window_bounds = array<i64: 1, 128>}, {transform_indices = @transform_4, window_bounds = array<i64: 8, 128>}]} {
    %c0 = arith.constant 0 : index
    %c0_0 = arith.constant 0 : index
    %0 = vector.load %arg1[%c0, %c0_0] : memref<8x128xf32, #tpu.memory_space<vmem>>, vector<8x128xf32>
    %c0_1 = arith.constant 0 : index
    %c0_2 = arith.constant 0 : index
    %1 = vector.load %arg2[%c0_1, %c0_2] : memref<128x128xf32, #tpu.memory_space<vmem>>, vector<128x128xf32>
    %cst = arith.constant dense<0.000000e+00> : vector<8x128xf32>
    %2 = tpu.matmul %0, %1, %cst {dimension_numbers = #tpu.dot_dimension_numbers<[1], [0], [0], [1], [0, 0, 1, 1], [], []>} : vector<8x128xf32>, vector<128x128xf32>, vector<8x128xf32> -> vector<8x128xf32>
    %3 = arith.subf %0, %2 : vector<8x128xf32>
    %4 = arith.mulf %3, %3 : vector<8x128xf32>
    %cst_3 = arith.constant dense<0.000000e+00> : vector<8x128xf32>
    %5 = tpu.matmul %4, %1, %cst_3 {dimension_numbers = #tpu.dot_dimension_numbers<[1], [0], [0], [1], [0, 0, 1, 1], [], []>} : vector<8x128xf32>, vector<128x128xf32>, vector<8x128xf32> -> vector<8x128xf32>
    %cst_4 = arith.constant 9.99999974E-6 : f32
    %6 = vector.broadcast %cst_4 : f32 to vector<8x128xf32>
    %7 = arith.addf %5, %6 : vector<8x128xf32>
    %8 = math.rsqrt %7 : vector<8x128xf32>
    %9 = arith.mulf %3, %8 : vector<8x128xf32>
    %c0_5 = arith.constant 0 : index
    %c0_6 = arith.constant 0 : index
    %10 = vector.load %arg3[%c0_5, %c0_6] : memref<128x128xf32, #tpu.memory_space<vmem>>, vector<128x128xf32>
    %cst_7 = arith.constant dense<0.000000e+00> : vector<8x128xf32>
    %11 = tpu.matmul %9, %10, %cst_7 {dimension_numbers = #tpu.dot_dimension_numbers<[1], [0], [0], [1], [0, 0, 1, 1], [], []>} : vector<8x128xf32>, vector<128x128xf32>, vector<8x128xf32> -> vector<8x128xf32>
    %c0_8 = arith.constant 0 : index
    %c0_9 = arith.constant 0 : index
    %12 = vector.load %arg4[%c0_8, %c0_9] : memref<1x128xf32, #tpu.memory_space<vmem>>, vector<1x128xf32>
    %13 = vector.broadcast %12 : vector<1x128xf32> to vector<8x128xf32>
    %14 = arith.addf %11, %13 : vector<8x128xf32>
    %c0_10 = arith.constant 0 : index
    %c0_11 = arith.constant 0 : index
    %15 = vector.load %arg5[%c0_10, %c0_11] : memref<8x128xf32, #tpu.memory_space<vmem>>, vector<8x128xf32>
    tpu.vector_store %arg5[%c0_10, %c0_11], %14 {strides = array<i32>} : memref<8x128xf32, #tpu.memory_space<vmem>>, vector<8x128xf32>,
    return
  }
  func.func @transform_0(%arg0: i32) -> (i32, i32) {
    %c0_i32 = arith.constant 0 : i32
    %c0_i32_0 = arith.constant 0 : i32
    return %arg0, %c0_i32 : i32, i32
  }
  func.func @transform_1(%arg0: i32) -> (i32, i32) {
    %c0_i32 = arith.constant 0 : i32
    %c0_i32_0 = arith.constant 0 : i32
    %c0_i32_1 = arith.constant 0 : i32
    return %c0_i32, %c0_i32_0 : i32, i32
  }
  func.func @transform_2(%arg0: i32) -> (i32, i32) {
    %c0_i32 = arith.constant 0 : i32
    %c0_i32_0 = arith.constant 0 : i32
    %c0_i32_1 = arith.constant 0 : i32
    return %c0_i32, %c0_i32_0 : i32, i32
  }
  func.func @transform_3(%arg0: i32) -> (i32, i32) {
    %c0_i32 = arith.constant 0 : i32
    %c0_i32_0 = arith.constant 0 : i32
    %c0_i32_1 = arith.constant 0 : i32
    return %c0_i32, %c0_i32_0 : i32, i32
  }
  func.func @transform_4(%arg0: i32) -> (i32, i32) {
    %c0_i32 = arith.constant 0 : i32
    %c0_i32_0 = arith.constant 0 : i32
    return %arg0, %c0_i32 : i32, i32
  }
}

</mosaic_0001>

<bundles_post_ra>
// kernel: tpu_custom_call.1
= control target key start
LH: loop header
LB: loop body
LE: loop exit
PB: predicated region body
PF: predicated region fallthrough
CT: control target
= control target key end

     0   :  { %9 = vsyncpa [#allocation3], 0  ;;  %s794_s0 = inlined_call_operand.hbm [shape: f32[4,128], index: 0, kind: input, shape index: {}]   ;;  %s795_s1 = inlined_call_operand.hbm [shape: f32[128,128], index: 1, kind: input, shape index: {}]   ;;  %s796_s2 = inlined_call_operand.hbm [shape: f32[128,128], index: 2, kind: input, shape index: {}]   ;;  %s797_s3 = inlined_call_operand.vmem [shape: f32[1,128], index: 3, kind: input, shape index: {}]   ;;  %s798_s4 = inlined_call_operand.hbm [shape: f32[4,128], index: 4, kind: output, shape index: {}]  }
   0x1   :  { %10 = vsyncpa [#allocation6], 0 }
   0x2   :  { %11 = vsyncpa [#allocation4], 0 }
   0x3   :  { %16 = vsyncadd [#allocation3], 64  ;;  %s668_s15 = smov [#allocation5]   ;;  %s574_s19 = scalar_lea.hbm %s795_s1, 2048 }
   0x4   :  { %s29_s16 = sshll.u32 %s668_s15, 4  ;;  %p575_p0 = scmp.ne.s32.totalorder %s795_s1, %s574_s19  ;;  %s30_s16 = int_to_ptr.vmem [resolvable:$true] %s29_s16 }
   0x5   :  { %p578_p1 = scmp.lt.u32.totalorder %s574_s19, %s795_s1 }
   0x7   :  { %p580_p2 = pnand %p578_p1, %p575_p0 }
   0x9   :  { %583 = shalt.err (!%p580_p2)
}
   0xa   :  { %s584_s24 = scalar_lea.vmem %s30_s16, 2048  ;;  %p589_p4 = scmp.lt.s32.totalorder %s30_s16, %s30_s16 }
   0xb   :  { %p585_p3 = scmp.ne.s32.totalorder %s30_s16, %s584_s24  ;;  %p590_p5 = scmp.lt.s32.totalorder %s584_s24, %s584_s24 }
   0xd   :  { %p591_p6 = por %p590_p5, %p589_p4 }
   0xf   :  { %p592_p7 = pnand %p591_p6, %p585_p3 }
  0x11   :  { %595 = shalt.err (!%p592_p7)
}
  0x12   :  { %s669_s25 = smov 128   ;;  %s670_s26 = smov 8  }
  0x13   :  { %35 = dma.hbm_to_vmem [thread:$0]  %s795_s1, 2048, %s30_s16, [#allocation6], %s669_s25, %s669_s25, %s670_s26  }
  0x14   :  { %s671_s29 = smov [#allocation2]   ;;  %s596_s7 = scalar_lea.hbm %s794_s0, 64 }
  0x15   :  { %s17_s30 = sshll.u32 %s671_s29, 4  ;;  %p597_p8 = scmp.ne.s32.totalorder %s794_s0, %s596_s7  ;;  %s18_s30 = int_to_ptr.vmem [resolvable:$true] %s17_s30 }
  0x16   :  { %p600_p9 = scmp.lt.u32.totalorder %s596_s7, %s794_s0 }
  0x18   :  { %p602_p10 = pnand %p600_p9, %p597_p8 }
  0x1a   :  { %605 = shalt.err (!%p602_p10)
}
  0x1b   :  { %s606_s12 = scalar_lea.vmem %s18_s30, 64  ;;  %s610_s1 = scalar_lea.vmem %s18_s30, 128 }
  0x1c   :  { %p607_p11 = scmp.ne.s32.totalorder %s18_s30, %s606_s12  ;;  %p611_p12 = scmp.lt.s32.totalorder %s18_s30, %s18_s30 }
  0x1d   :  { %p612_p13 = scmp.lt.s32.totalorder %s610_s1, %s606_s12 }
  0x1f   :  { %p613_p0 = por %p612_p13, %p611_p12 }
  0x21   :  { %p614_p1 = pnand %p613_p0, %p607_p11 }
  0x23   :  { %617 = shalt.err (!%p614_p1)
}
  0x24   :  { %s672_s13 = smov 64   ;;  %s673_s14 = smov 4  }
  0x25   :  { %23 = dma.hbm_to_vmem [thread:$0]  %s794_s0, 64, %s18_s30, [#allocation3], %s672_s13, %s672_s13, %s673_s14  }
  0x26   :  { %s674_s17 = smov [#allocation7]   ;;  %s618_s21 = scalar_lea.hbm %s796_s2, 2048 }
  0x27   :  { %s41_s18 = sshll.u32 %s674_s17, 4  ;;  %p619_p2 = scmp.ne.s32.totalorder %s796_s2, %s618_s21  ;;  %s42_s18 = int_to_ptr.vmem [resolvable:$true] %s41_s18 }
  0x28   :  { %p622_p3 = scmp.lt.u32.totalorder %s618_s21, %s796_s2 }
  0x2a   :  { %p624_p4 = pnand %p622_p3, %p619_p2 }
  0x2c   :  { %627 = shalt.err (!%p624_p4)
}
  0x2d   :  { %s628_s28 = scalar_lea.vmem %s42_s18, 2048  ;;  %p633_p6 = scmp.lt.s32.totalorder %s42_s18, %s42_s18 }
  0x2e   :  { %p629_p5 = scmp.ne.s32.totalorder %s42_s18, %s628_s28  ;;  %p634_p7 = scmp.lt.s32.totalorder %s628_s28, %s628_s28 }
  0x30   :  { %p635_p8 = por %p634_p7, %p633_p6 }
  0x32   :  { %p636_p9 = pnand %p635_p8, %p629_p5 }
  0x34   :  { %639 = shalt.err (!%p636_p9)
}
  0x35   :  { %47 = dma.hbm_to_vmem [thread:$0]  %s796_s2, 2048, %s42_s18, [#allocation6], %s669_s25, %s669_s25, %s670_s26  }
  0x36   :  { %662 = dma.done.wait [#allocation3], 128  }
  0x37   :  { %663 = vsyncadd [#allocation3], 4294967168 }
  0x38   :  { %664 = dma.done.wait [#allocation6], 4096  }
  0x39   :  { %665 = vsyncadd [#allocation6], 4294963200  ;;  %v675_v0 = vmov 0.0|0.0   ;;  %vm676_vm0 = vmmov 0   ;;  %v677_v1 = vmov 0.0   ;;  %v60_v2 = vld [vmem:[#allocation5] sm:$0xff] }
  0x3a   :  { %489 = vmatprep.subr.bf16.mxu0 %v675_v0  ;;  %416 = vmatprep.mubr.msk.f32.mxu0 %vm676_vm0, %v677_v1  ;;  %v61_v3 = vld [vmem:[#allocation5 + $0x8] sm:$0xff]  ;;  %v62_v4 = vld [vmem:[#allocation5 + $0x10] sm:$0xff]  ;;  %v63_v6 = vld [vmem:[#allocation5 + $0x18] sm:$0xff] }
  0x3b   :  { %513 = vmatprep.subr.bf16.mxu1 %v675_v0  ;;  %451 = vmatprep.mubr.msk.f32.mxu1 %vm676_vm0, %v677_v1  ;;  %v490_v5 = vpack.c.bf16 %v61_v3, %v60_v2  ;;  %v493_v7 = vpack.c.bf16 %v63_v6, %v62_v4  ;;  %v64_v8 = vld [vmem:[#allocation5 + $0x20] sm:$0xff]  ;;  %v65_v9 = vld [vmem:[#allocation5 + $0x28] sm:$0xff]  ;;  %v66_v11 = vld [vmem:[#allocation5 + $0x30] sm:$0xff] }
  0x3c   :  { %v496_v10 = vpack.c.bf16 %v65_v9, %v64_v8  ;;  %v67_v12 = vld [vmem:[#allocation5 + $0x38] sm:$0xff]  ;;  %v68_v14 = vld [vmem:[#allocation5 + $0x40] sm:$0xff]  ;;  %v69_v15 = vld [vmem:[#allocation5 + $0x48] sm:$0xff] }
  0x3d   :  { %491 = vmatpush3.bf16.msra.mxu0 %v490_v5  ;;  %515 = vmatpush3.bf16.msra.mxu1 %v490_v5  ;;  %v499_v13 = vpack.c.bf16 %v67_v12, %v66_v11  ;;  %v502_v16 = vpack.c.bf16 %v69_v15, %v68_v14  ;;  %v70_v17 = vld [vmem:[#allocation5 + $0x50] sm:$0xff]  ;;  %v71_v18 = vld [vmem:[#allocation5 + $0x58] sm:$0xff]  ;;  %v72_v20 = vld [vmem:[#allocation5 + $0x60] sm:$0xff] }
  0x3e   :  { %492 = vmatprep.subr.bf16.mxu0 %v675_v0  ;;  %516 = vmatprep.subr.bf16.mxu1 %v675_v0  ;;  %v505_v19 = vpack.c.bf16 %v71_v18, %v70_v17  ;;  %v73_v21 = vld [vmem:[#allocation5 + $0x68] sm:$0xff]  ;;  %v74_v23 = vld [vmem:[#allocation5 + $0x70] sm:$0xff]  ;;  %v75_v24 = vld [vmem:[#allocation5 + $0x78] sm:$0xff] }
  0x3f   :  { %v508_v22 = vpack.c.bf16 %v73_v21, %v72_v20  ;;  %v511_v25 = vpack.c.bf16 %v75_v24, %v74_v23  ;;  %v59_v26 = vld [vmem:[#allocation2] sm:$0xff]  ;;  %v220_v27 = vld [vmem:[#allocation7] sm:$0xff]  ;;  %v221_v28 = vld [vmem:[#allocation7 + $0x8] sm:$0xff] }
  0x40   :  { %v222_v29 = vld [vmem:[#allocation7 + $0x10] sm:$0xff]  ;;  %v538_v30 = vpack.c.bf16 %v221_v28, %v220_v27  ;;  %v223_v31 = vld [vmem:[#allocation7 + $0x18] sm:$0xff]  ;;  %v224_v33 = vld [vmem:[#allocation7 + $0x20] sm:$0xff] }
  0x41   :  { %494 = vmatpush3.bf16.msra.mxu0 %v493_v7  ;;  %518 = vmatpush3.bf16.msra.mxu1 %v493_v7  ;;  %v541_v32 = vpack.c.bf16 %v223_v31, %v222_v29  ;;  %v225_v34 = vld [vmem:[#allocation7 + $0x28] sm:$0xff]  ;;  %v226_v36 = vld [vmem:[#allocation7 + $0x30] sm:$0xff]  ;;  %v227_v37 = vld [vmem:[#allocation7 + $0x38] sm:$0xff] }
  0x42   :  { %495 = vmatprep.subr.bf16.mxu0 %v675_v0  ;;  %519 = vmatprep.subr.bf16.mxu1 %v675_v0  ;;  %v544_v35 = vpack.c.bf16 %v225_v34, %v224_v33  ;;  %v547_v38 = vpack.c.bf16 %v227_v37, %v226_v36  ;;  %v228_v43 = vld [vmem:[#allocation7 + $0x40] sm:$0xff]  ;;  %v229_v44 = vld [vmem:[#allocation7 + $0x48] sm:$0xff]  ;;  %v230_v46 = vld [vmem:[#allocation7 + $0x50] sm:$0xff] }
  0x43   :  { %v550_v45 = vpack.c.bf16 %v229_v44, %v228_v43  ;;  %v231_v47 = vld [vmem:[#allocation7 + $0x58] sm:$0xff]  ;;  %v232_v49 = vld [vmem:[#allocation7 + $0x60] sm:$0xff]  ;;  %v233_v50 = vld [vmem:[#allocation7 + $0x68] sm:$0xff] }
  0x44   :  { %v553_v48 = vpack.c.bf16 %v231_v47, %v230_v46  ;;  %v556_v51 = vpack.c.bf16 %v233_v50, %v232_v49  ;;  %v234_v52 = vld [vmem:[#allocation7 + $0x70] sm:$0xff]  ;;  %v235_v53 = vld [vmem:[#allocation7 + $0x78] sm:$0xff] }
  0x45   :  { %497 = vmatpush3.bf16.msra.mxu0 %v496_v10  ;;  %521 = vmatpush3.bf16.msra.mxu1 %v496_v10  ;;  %v559_v54 = vpack.c.bf16 %v235_v53, %v234_v52  ;;  %v332_v60 = vld [vmem:[%s797_s3] ss:$0 sm:$0xff] }
  0x46   :  { %498 = vmatprep.subr.bf16.mxu0 %v675_v0  ;;  %522 = vmatprep.subr.bf16.mxu1 %v675_v0 }
  0x49   :  { %500 = vmatpush3.bf16.msra.mxu0 %v499_v13  ;;  %524 = vmatpush3.bf16.msra.mxu1 %v499_v13 }
  0x4a   :  { %501 = vmatprep.subr.bf16.mxu0 %v675_v0  ;;  %525 = vmatprep.subr.bf16.mxu1 %v675_v0 }
  0x4d   :  { %503 = vmatpush3.bf16.msra.mxu0 %v502_v16  ;;  %527 = vmatpush3.bf16.msra.mxu1 %v502_v16 }
  0x4e   :  { %504 = vmatprep.subr.bf16.mxu0 %v675_v0  ;;  %528 = vmatprep.subr.bf16.mxu1 %v675_v0 }
  0x51   :  { %506 = vmatpush3.bf16.msra.mxu0 %v505_v19  ;;  %530 = vmatpush3.bf16.msra.mxu1 %v505_v19 }
  0x52   :  { %507 = vmatprep.subr.bf16.mxu0 %v675_v0  ;;  %531 = vmatprep.subr.bf16.mxu1 %v675_v0 }
  0x55   :  { %509 = vmatpush3.bf16.msra.mxu0 %v508_v22  ;;  %533 = vmatpush3.bf16.msra.mxu1 %v508_v22 }
  0x56   :  { %510 = vmatprep.subr.bf16.mxu0 %v675_v0  ;;  %534 = vmatprep.subr.bf16.mxu1 %v675_v0 }
  0x59   :  { %512 = vmatpush3.bf16.msra.mxu0 %v511_v25  ;;  %536 = vmatpush3.bf16.msra.mxu1 %v511_v25 }
  0x5a   :  { %537 = vmatprep.subr.bf16.mxu0 %v675_v0 }
  0x5c   :  { %417 = vmatmul.mubr.f32.vlgmr.msra.gmra.mrb[0].mxu0 %v59_v26 }
  0x5d   :  { %486 = vmatprep.mubr.msk.f32.mxu0 %vm676_vm0, %v677_v1  ;;  %539 = vmatpush3.bf16.msra.mxu0 %v538_v30 }
  0x5e   :  { %540 = vmatprep.subr.bf16.mxu0 %v675_v0 }
  0x61   :  { %542 = vmatpush3.bf16.msra.mxu0 %v541_v32 }
  0x62   :  { %543 = vmatprep.subr.bf16.mxu0 %v675_v0 }
  0x65   :  { %545 = vmatpush3.bf16.msra.mxu0 %v544_v35 }
  0x66   :  { %546 = vmatprep.subr.bf16.mxu0 %v675_v0 }
  0x69   :  { %548 = vmatpush3.bf16.msra.mxu0 %v547_v38 }
  0x6a   :  { %549 = vmatprep.subr.bf16.mxu0 %v675_v0 }
  0x6d   :  { %551 = vmatpush3.bf16.msra.mxu0 %v550_v45 }
  0x6e   :  { %552 = vmatprep.subr.bf16.mxu0 %v675_v0 }
  0x71   :  { %554 = vmatpush3.bf16.msra.mxu0 %v553_v48 }
  0x72   :  { %555 = vmatprep.subr.bf16.mxu0 %v675_v0 }
  0x75   :  { %557 = vmatpush3.bf16.msra.mxu0 %v556_v51 }
  0x76   :  { %558 = vmatprep.subr.bf16.mxu0 %v675_v0 }
  0x79   :  { %560 = vmatpush3.bf16.msra.mxu0 %v559_v54 }
 0x12f   :  { %v142_v39 = vpop.f32.mrb[0].mxu0 }
 0x130   :  { %v146_v40 = vsub.f32 %v59_v26, %v142_v39  ;;  %v418_v41 = vpop.f32.mrb[1].mxu0 }
 0x132   :  { %v147_v42 = vmul.f32 %v146_v40, %v146_v40 }
 0x134   :  { %452 = vmatmul.mubr.f32.vlgmr.msra.gmra.mrb[0].mxu1 %v147_v42 }
 0x207   :  { %v214_v55 = vpop.f32.mrb[0].mxu1 }
 0x208   :  { %v215_v56 = vadd.f32 1e-05, %v214_v55  ;;  %v453_v57 = vpop.f32.mrb[1].mxu1 }
 0x20a   :  { %572 = vrsqrt.f32 %v215_v56 }
 0x214   :  { %v573_v58 = vpop.eup %572 }
 0x215   :  { %v219_v59 = vmul.f32 %v573_v58, %v146_v40 }
 0x217   :  { %487 = vmatmul.mubr.f32.vlgmr.msra.gmra.mrb[2].mxu0 %v219_v59 }
 0x2ea   :  { %v309_v61 = vpop.f32.mrb[2].mxu0 }
 0x2eb   :  { %v310_v62 = vadd.f32 %v332_v60, %v309_v61  ;;  %v488_v63 = vpop.f32.mrb[3].mxu0 }
 0x2ed   :  { %313 = vst [vmem:[#allocation8] sm:$0xff] %v310_v62 }
 0x2ee   :  { %318 = vsyncadd [#allocation4], 64  ;;  %s678_s26 = smov [#allocation8]  }
 0x2ef   :  { %s319_s30 = sshll.u32 %s678_s26, 4  ;;  %s320_s30 = int_to_ptr.vmem [resolvable:$true] %s319_s30 }
 0x2f0   :  { %s640_s5 = scalar_lea.vmem %s320_s30, 64  ;;  %s644_s6 = scalar_lea.vmem %s320_s30, 128 }
 0x2f1   :  { %p641_p10 = scmp.ne.s32.totalorder %s320_s30, %s640_s5  ;;  %p645_p11 = scmp.lt.s32.totalorder %s320_s30, %s320_s30 }
 0x2f2   :  { %p646_p12 = scmp.lt.s32.totalorder %s644_s6, %s640_s5 }
 0x2f4   :  { %p647_p13 = por %p646_p12, %p645_p11 }
 0x2f6   :  { %p648_p0 = pnand %p647_p13, %p641_p10 }
 0x2f8   :  { %651 = shalt.err (!%p648_p0)
}
 0x2f9   :  { %s652_s3 = scalar_lea.hbm %s798_s4, 64 }
 0x2fa   :  { %p653_p1 = scmp.ne.s32.totalorder %s798_s4, %s652_s3  ;;  %p656_p2 = scmp.lt.u32.totalorder %s652_s3, %s798_s4 }
 0x2fc   :  { %p658_p3 = pnand %p656_p2, %p653_p1 }
 0x2fe   :  { %661 = shalt.err (!%p658_p3)
}
 0x2ff   :  { %325 = dma.vmem_to_hbm [thread:$0]  %s320_s30, 64, %s798_s4, [#allocation4], %s672_s13, %s672_s13, %s673_s14  }
 0x300   :  { %666 = dma.done.wait [#allocation4], 128  }
 0x301   :  { %667 = vsyncadd [#allocation4], 4294967168 }
 0x302   :  { %329 = vsyncpa [#allocation3], 1 }
 0x303   :  { %330 = vsyncpa [#allocation6], 1 }
 0x304   :  { %331 = vsyncpa [#allocation4], 1 }

</bundles_post_ra>
